<compile_context>
chip_gen: v7x
topology: tpu7x:2x2x1
jax: 0.10.0
libtpu: 0.0.40
codegen_flags: <defaults>
</compile_context>

<pallas_src>
import functools

import jax
import jax.numpy as jnp
from jax import lax
from jax.experimental import pallas as pl
from jax.experimental.pallas import tpu as pltpu


def _round_up(x, m):
    return ((x + m - 1) // m) * m


def _vmem_capacity_bytes():
    try:
        info = pltpu.get_tpu_info()
        cap = getattr(info, "vmem_capacity_bytes", None)
        if cap:
            return int(cap)
    except Exception:
        pass
    return 64 << 20  # conservative fallback (v7x per-core VMEM)


def _multilabel_kernel(x_ref, wp_ref, bp_ref, wo_ref, bo_ref, labels_ref,
                       logits_ref, loss_ref, acc_ref, *,
                       seq_len, batch, n_labels, tile_b, tile_s, mask_seq):
    bi = pl.program_id(0)
    si = pl.program_id(1)
    n_s = pl.num_programs(1)

    # ---- encoder (streaming): accumulate the sequence sum for this batch tile ----
    x = x_ref[...].astype(jnp.float32)                       # (tB, tS, D)
    if mask_seq:
        # Ragged last seq tile: boundary-block tail rows are unspecified -> mask.
        seq_idx = si * tile_s + lax.broadcasted_iota(jnp.int32, x.shape, 1)
        x = jnp.where(seq_idx < seq_len, x, 0.0)
    part = jnp.sum(x, axis=1)                                # (tB, D)

    @pl.when(si == 0)
    def _():
        acc_ref[...] = jnp.zeros_like(acc_ref)

    acc_ref[...] += part

    # ---- finalize once per batch tile: pooler + output layer + BCE loss ----
    @pl.when(si == n_s - 1)
    def _():
        pooled_in = acc_ref[...] * jnp.float32(1.0 / seq_len)     # mean over seq
        pooled = jnp.tanh(
            jnp.dot(pooled_in, wp_ref[...], preferred_element_type=jnp.float32)
            + bp_ref[...])                                         # pooler_output
        z = (jnp.dot(pooled, wo_ref[...], preferred_element_type=jnp.float32)
             + bo_ref[...])                                        # (tB, Lp) logits
        logits_ref[...] = z.astype(logits_ref.dtype)

        # BCEWithLogitsLoss, numerically stable per-element form; reduce to a
        # per-batch-tile scalar inside the kernel (no (Bp, Lp) loss map in HBM).
        y = labels_ref[...].astype(jnp.float32)
        per = jnp.maximum(z, 0.0) - z * y + jax.nn.softplus(-jnp.abs(z))

        tb, lp = per.shape
        row = lax.broadcasted_iota(jnp.int32, (tb, lp), 0) + bi * tile_b
        col = lax.broadcasted_iota(jnp.int32, (tb, lp), 1)
        valid = (row < batch) & (col < n_labels)
        tile_sum = jnp.sum(jnp.where(valid, per, 0.0))

        r = lax.broadcasted_iota(jnp.int32, loss_ref.shape, 1)
        c = lax.broadcasted_iota(jnp.int32, loss_ref.shape, 2)
        loss_ref[...] = jnp.where((r == 0) & (c == 0), tile_sum, 0.0)


def multilabel_forward(x, w_pool, b_pool, w_out, b_out, labels, *, tile_b=128):
    """Returns (logits, loss) matching MultiLabelModel.forward (PyTorch returns
    logits and stores the BCEWithLogitsLoss on the module)."""
    B, S, D = x.shape
    H = w_pool.shape[1]
    L = w_out.shape[1]
    f32 = jnp.float32

    # ---- batch tiling (keep >= 2 'parallel' tiles when possible: v7x megacore) --
    tB = max(8, _round_up(min(tile_b, B), 8))
    nB = pl.cdiv(B, tB)
    if nB == 1 and B > 8:
        tB = max(8, _round_up(pl.cdiv(B, 2), 8))
        nB = pl.cdiv(B, tB)
    Bp = nB * tB
    Lp = _round_up(L, 128)

    # ---- small resident operands (padded / reshaped; x itself is NOT copied) ----
    wp = jnp.asarray(w_pool, f32)
    bp = jnp.asarray(b_pool, f32).reshape(1, H)
    wo = jnp.pad(jnp.asarray(w_out, f32), ((0, 0), (0, Lp - L)))
    bo = jnp.pad(jnp.asarray(b_out, f32), (0, Lp - L)).reshape(1, Lp)
    lab = jnp.pad(jnp.asarray(labels), ((0, Bp - B), (0, Lp - L)))  # original dtype

    # ---- VMEM budget -> sequence tile size ----
    vmem_cap = _vmem_capacity_bytes()
    vmem_target = max(32 << 20, min(vmem_cap - (16 << 20), 96 << 20))

    resident = (wp.nbytes + bp.nbytes + wo.nbytes + bo.nbytes
                + tB * Lp * lab.dtype.itemsize        # labels tile (1 buffer)
                + tB * D * 4)                         # accumulator scratch
    out_bufs = 2 * (tB * Lp * 4) + 2 * (8 * 128 * 4)  # double-buffered outputs

    x_row_bytes = tB * D * x.dtype.itemsize           # bytes per seq step per tile
    x_budget = max(3 * 8 * x_row_bytes, vmem_target - resident - out_bufs - (4 << 20))
    tS = max(8, (x_budget // (3 * x_row_bytes)) // 8 * 8)
    tS = min(tS, max(8, ((24 << 20) // x_row_bytes) // 8 * 8))  # per-tile cap
    tS = min(tS, _round_up(S, 8))
    nS = pl.cdiv(S, tS)
    mask_seq = (S % tS) != 0
    x_depth = 3 if nS > 2 else 2                       # deeper x pipeline if useful

    x_tile_bytes = tB * tS * D * x.dtype.itemsize
    need = resident + out_bufs + x_depth * x_tile_bytes
    vmem_limit = int(max(32 << 20, min(need + (8 << 20), vmem_cap - (8 << 20))))

    kernel = functools.partial(_multilabel_kernel, seq_len=S, batch=B,
                               n_labels=L, tile_b=tB, tile_s=tS,
                               mask_seq=mask_seq)

    resident_mode = pl.Buffered(1)   # grid-(nearly-)invariant operands: 1 buffer
    grid_spec = pltpu.PrefetchScalarGridSpec(
        num_scalar_prefetch=0,
        grid=(nB, nS),
        in_specs=[
            pl.BlockSpec((tB, tS, D), lambda bi, si: (bi, si, 0),
                         pipeline_mode=pl.Buffered(x_depth)),        # x (streamed)
            pl.BlockSpec((D, H), lambda bi, si: (0, 0),
                         pipeline_mode=resident_mode),               # w_pool
            pl.BlockSpec((1, H), lambda bi, si: (0, 0),
                         pipeline_mode=resident_mode),               # b_pool
            pl.BlockSpec((H, Lp), lambda bi, si: (0, 0),
                         pipeline_mode=resident_mode),               # w_out
            pl.BlockSpec((1, Lp), lambda bi, si: (0, 0),
                         pipeline_mode=resident_mode),               # b_out
            pl.BlockSpec((tB, Lp), lambda bi, si: (bi, 0),
                         pipeline_mode=resident_mode),               # labels
        ],
        out_specs=(
            pl.BlockSpec((tB, Lp), lambda bi, si: (bi, 0)),          # logits
            pl.BlockSpec((1, 8, 128), lambda bi, si: (bi, 0, 0)),    # loss partial
        ),
        scratch_shapes=[pltpu.VMEM((tB, D), jnp.float32)],
    )

    logits_p, loss_partial = pl.pallas_call(
        kernel,
        out_shape=(
            jax.ShapeDtypeStruct((Bp, Lp), jnp.float32),
            jax.ShapeDtypeStruct((nB, 8, 128), jnp.float32),
        ),
        grid_spec=grid_spec,
        compiler_params=pltpu.CompilerParams(
            dimension_semantics=("parallel", "arbitrary"),
            vmem_limit_bytes=vmem_limit),
    )(x, wp, bp, wo, bo, lab)

    logits = logits_p[:B, :L]
    # Padding/garbage rows were masked to 0 in-kernel; fixed divisor is exact.
    loss = jnp.sum(loss_partial) / (B * L)
    return logits, loss


if __name__ == "__main__":
    # Small shapes consistent with the forward pass.
    B, S, D, H, L = 2, 8, 32, 32, 8

    key = jax.random.PRNGKey(0)
    k_x, k_wp, k_bp, k_wo, k_bo, k_lab = jax.random.split(key, 6)

    x = jax.random.normal(k_x, (B, S, D), dtype=jnp.float32)

    # Deterministic PyTorch-Linear-style init: U(-1/sqrt(fan_in), 1/sqrt(fan_in)).
    lim_p = 1.0 / (D ** 0.5)
    lim_o = 1.0 / (H ** 0.5)
    w_pool = jax.random.uniform(k_wp, (D, H), jnp.float32, -lim_p, lim_p)
    b_pool = jax.random.uniform(k_bp, (H,), jnp.float32, -lim_p, lim_p)
    w_out = jax.random.uniform(k_wo, (H, L), jnp.float32, -lim_o, lim_o)
    b_out = jax.random.uniform(k_bo, (L,), jnp.float32, -lim_o, lim_o)

    labels = jax.random.bernoulli(k_lab, 0.3, (B, L)).astype(jnp.float32)

    # Host-side fidelity check from the PyTorch module (concrete arrays, not jitted).
    assert int(jnp.sum(labels == 0) + jnp.sum(labels == 1)) == B * L, \
        "labels must be binary (0/1)"

    logits, loss = jax.jit(multilabel_forward)(x, w_pool, b_pool, w_out,
                                               b_out, labels)
    jax.block_until_ready((logits, loss))

    # Pure-JAX reference check.
    pooled_ref = jnp.tanh(jnp.mean(x, axis=1) @ w_pool + b_pool)
    logits_ref = pooled_ref @ w_out + b_out
    z = logits_ref
    loss_ref = jnp.mean(jnp.maximum(z, 0.0) - z * labels
                        + jnp.log1p(jnp.exp(-jnp.abs(z))))
    assert jnp.allclose(logits, logits_ref, atol=1e-5, rtol=1e-5), "logits mismatch"
    assert jnp.allclose(loss, loss_ref, atol=1e-5, rtol=1e-5), "loss mismatch"

    print("KERNEL_OK")
</pallas_src>

<mosaic_0001>
module attributes {stable_mosaic.version = 11 : i64} {
  func.func @_multilabel_kernel(%arg0: i32, %arg1: i32, %arg2: memref<8x8x32xf32, #tpu.memory_space<vmem>>, %arg3: memref<32x32xf32, #tpu.memory_space<vmem>>, %arg4: memref<1x32xf32, #tpu.memory_space<vmem>>, %arg5: memref<32x128xf32, #tpu.memory_space<vmem>>, %arg6: memref<1x128xf32, #tpu.memory_space<vmem>>, %arg7: memref<8x128xf32, #tpu.memory_space<vmem>>, %arg8: memref<8x128xf32, #tpu.memory_space<vmem>>, %arg9: memref<1x8x128xf32, #tpu.memory_space<vmem>>, %arg10: memref<8x32xf32, #tpu.memory_space<vmem>>) attributes {dimension_semantics = [#tpu.dimension_semantics<parallel>, #tpu.dimension_semantics<arbitrary>], iteration_bounds = array<i64: 1, 1>, scalar_prefetch = 0 : i64, scratch_operands = 1 : i64, tpu.core_type = #tpu.core_type<tc>, window_params = [{pipeline_mode = #tpu.pipeline_mode<double_buffered>, transform_indices = @transform_0, window_bounds = array<i64: 8, 8, 32>}, {pipeline_mode = #tpu.pipeline_mode<synchronous>, transform_indices = @transform_1, window_bounds = array<i64: 32, 32>}, {pipeline_mode = #tpu.pipeline_mode<synchronous>, transform_indices = @transform_2, window_bounds = array<i64: 1, 32>}, {pipeline_mode = #tpu.pipeline_mode<synchronous>, transform_indices = @transform_3, window_bounds = array<i64: 32, 128>}, {pipeline_mode = #tpu.pipeline_mode<synchronous>, transform_indices = @transform_4, window_bounds = array<i64: 1, 128>}, {pipeline_mode = #tpu.pipeline_mode<synchronous>, transform_indices = @transform_5, window_bounds = array<i64: 8, 128>}, {transform_indices = @transform_6, window_bounds = array<i64: 8, 128>}, {transform_indices = @transform_7, window_bounds = array<i64: 1, 8, 128>}]} {
    %c0 = arith.constant 0 : index
    %c0_0 = arith.constant 0 : index
    %c0_1 = arith.constant 0 : index
    %0 = vector.load %arg2[%c0, %c0_0, %c0_1] : memref<8x8x32xf32, #tpu.memory_space<vmem>>, vector<8x8x32xf32>
    %cst = arith.constant dense<0.000000e+00> : vector<8x32xf32>
    %1 = vector.multi_reduction <add>, %0, %cst [1] : vector<8x8x32xf32> to vector<8x32xf32>
    %c0_i32 = arith.constant 0 : i32
    %2 = arith.cmpi eq, %arg1, %c0_i32 : i32
    %3 = arith.extui %2 : i1 to i32
    %c0_i32_2 = arith.constant 0 : i32
    %4 = arith.cmpi ne, %3, %c0_i32_2 : i32
    scf.if %4 {
      %cst_9 = arith.constant 0.000000e+00 : f32
      %11 = vector.broadcast %cst_9 : f32 to vector<8x32xf32>
      %c0_10 = arith.constant 0 : index
      %c0_11 = arith.constant 0 : index
      %12 = vector.load %arg10[%c0_10, %c0_11] : memref<8x32xf32, #tpu.memory_space<vmem>>, vector<8x32xf32>
      tpu.vector_store %arg10[%c0_10, %c0_11], %11 {strides = array<i32>} : memref<8x32xf32, #tpu.memory_space<vmem>>, vector<8x32xf32>,
    } else {
    }
    %c0_3 = arith.constant 0 : index
    %c0_4 = arith.constant 0 : index
    %5 = vector.load %arg10[%c0_3, %c0_4] : memref<8x32xf32, #tpu.memory_space<vmem>>, vector<8x32xf32>
    %6 = arith.addf %5, %1 : vector<8x32xf32>
    %c0_5 = arith.constant 0 : index
    %c0_6 = arith.constant 0 : index
    %7 = vector.load %arg10[%c0_5, %c0_6] : memref<8x32xf32, #tpu.memory_space<vmem>>, vector<8x32xf32>
    tpu.vector_store %arg10[%c0_5, %c0_6], %6 {strides = array<i32>} : memref<8x32xf32, #tpu.memory_space<vmem>>, vector<8x32xf32>,
    %c0_i32_7 = arith.constant 0 : i32
    %8 = arith.cmpi eq, %arg1, %c0_i32_7 : i32
    %9 = arith.extui %8 : i1 to i32
    %c0_i32_8 = arith.constant 0 : i32
    %10 = arith.cmpi ne, %9, %c0_i32_8 : i32
    scf.if %10 {
      %c0_9 = arith.constant 0 : index
      %c0_10 = arith.constant 0 : index
      %11 = vector.load %arg10[%c0_9, %c0_10] : memref<8x32xf32, #tpu.memory_space<vmem>>, vector<8x32xf32>
      %cst_11 = arith.constant 1.250000e-01 : f32
      %12 = vector.broadcast %cst_11 : f32 to vector<8x32xf32>
      %13 = arith.mulf %11, %12 : vector<8x32xf32>
      %c0_12 = arith.constant 0 : index
      %c0_13 = arith.constant 0 : index
      %14 = vector.load %arg3[%c0_12, %c0_13] : memref<32x32xf32, #tpu.memory_space<vmem>>, vector<32x32xf32>
      %cst_14 = arith.constant dense<0.000000e+00> : vector<8x32xf32>
      %15 = tpu.matmul %13, %14, %cst_14 {dimension_numbers = #tpu.dot_dimension_numbers<[1], [0], [0], [1], [0, 0, 1, 1], [], []>} : vector<8x32xf32>, vector<32x32xf32>, vector<8x32xf32> -> vector<8x32xf32>
      %c0_15 = arith.constant 0 : index
      %c0_16 = arith.constant 0 : index
      %16 = vector.load %arg4[%c0_15, %c0_16] : memref<1x32xf32, #tpu.memory_space<vmem>>, vector<1x32xf32>
      %17 = vector.broadcast %16 : vector<1x32xf32> to vector<8x32xf32>
      %18 = arith.addf %15, %17 : vector<8x32xf32>
      %19 = math.tanh %18 : vector<8x32xf32>
      %c0_17 = arith.constant 0 : index
      %c0_18 = arith.constant 0 : index
      %20 = vector.load %arg5[%c0_17, %c0_18] : memref<32x128xf32, #tpu.memory_space<vmem>>, vector<32x128xf32>
      %cst_19 = arith.constant dense<0.000000e+00> : vector<8x128xf32>
      %21 = tpu.matmul %19, %20, %cst_19 {dimension_numbers = #tpu.dot_dimension_numbers<[1], [0], [0], [1], [0, 0, 1, 1], [], []>} : vector<8x32xf32>, vector<32x128xf32>, vector<8x128xf32> -> vector<8x128xf32>
      %c0_20 = arith.constant 0 : index
      %c0_21 = arith.constant 0 : index
      %22 = vector.load %arg6[%c0_20, %c0_21] : memref<1x128xf32, #tpu.memory_space<vmem>>, vector<1x128xf32>
      %23 = vector.broadcast %22 : vector<1x128xf32> to vector<8x128xf32>
      %24 = arith.addf %21, %23 : vector<8x128xf32>
      %c0_22 = arith.constant 0 : index
      %c0_23 = arith.constant 0 : index
      %25 = vector.load %arg8[%c0_22, %c0_23] : memref<8x128xf32, #tpu.memory_space<vmem>>, vector<8x128xf32>
      tpu.vector_store %arg8[%c0_22, %c0_23], %24 {strides = array<i32>} : memref<8x128xf32, #tpu.memory_space<vmem>>, vector<8x128xf32>,
      %c0_24 = arith.constant 0 : index
      %c0_25 = arith.constant 0 : index
      %26 = vector.load %arg7[%c0_24, %c0_25] : memref<8x128xf32, #tpu.memory_space<vmem>>, vector<8x128xf32>
      %cst_26 = arith.constant 0.000000e+00 : f32
      %27 = vector.broadcast %cst_26 : f32 to vector<8x128xf32>
      %28 = arith.maximumf %24, %27 : vector<8x128xf32>
      %29 = arith.mulf %24, %26 : vector<8x128xf32>
      %30 = arith.subf %28, %29 : vector<8x128xf32>
      %31 = math.absf %24 : vector<8x128xf32>
      %cst_27 = arith.constant 0.000000e+00 : f32
      %32 = vector.broadcast %cst_27 : f32 to vector<8x128xf32>
      %33 = arith.subf %32, %31 : vector<8x128xf32>
      %cst_28 = arith.constant 0.000000e+00 : f32
      %34 = vector.broadcast %cst_28 : f32 to vector<8x128xf32>
      %35 = arith.maximumf %33, %34 : vector<8x128xf32>
      %36 = vector.broadcast %cst_28 : f32 to vector<8x128xf32>
      %37 = arith.subf %33, %36 : vector<8x128xf32>
      %38 = arith.cmpf one, %37, %37 : vector<8x128xf32>
      %39 = vector.broadcast %cst_28 : f32 to vector<8x128xf32>
      %40 = arith.addf %33, %39 : vector<8x128xf32>
      %41 = math.absf %37 : vector<8x128xf32>
      %cst_29 = arith.constant 0.000000e+00 : f32
      %42 = vector.broadcast %cst_29 : f32 to vector<8x128xf32>
      %43 = arith.subf %42, %41 : vector<8x128xf32>
      %44 = math.exp %43 : vector<8x128xf32>
      %45 = math.log1p %44 : vector<8x128xf32>
      %46 = arith.addf %35, %45 : vector<8x128xf32>
      %47 = arith.select %38, %40, %46 : vector<8x128xi1>, vector<8x128xf32>
      %48 = arith.addf %30, %47 : vector<8x128xf32>
      %49 = tpu.iota {dimensions = array<i32: 0>} : vector<8x128xi32>
      %c8_i32 = arith.constant 8 : i32
      %50 = arith.muli %arg0, %c8_i32 : i32
      %51 = vector.broadcast %50 : i32 to vector<8x128xi32>
      %52 = arith.addi %49, %51 : vector<8x128xi32>
      %53 = tpu.iota {dimensions = array<i32: 1>} : vector<8x128xi32>
      %c2_i32 = arith.constant 2 : i32
      %54 = vector.broadcast %c2_i32 : i32 to vector<8x128xi32>
      %55 = arith.cmpi slt, %52, %54 : vector<8x128xi32>
      %c8_i32_30 = arith.constant 8 : i32
      %56 = vector.broadcast %c8_i32_30 : i32 to vector<8x128xi32>
      %57 = arith.cmpi slt, %53, %56 : vector<8x128xi32>
      %58 = arith.andi %55, %57 : vector<8x128xi1>
      %cst_31 = arith.constant 0.000000e+00 : f32
      %59 = vector.broadcast %cst_31 : f32 to vector<8x128xf32>
      %60 = arith.select %58, %48, %59 : vector<8x128xi1>, vector<8x128xf32>
      %61 = vector.shape_cast %60 : vector<8x128xf32> to vector<1x8x128xf32>
      %cst_32 = arith.constant dense<0.000000e+00> : vector<1xf32>
      %62 = vector.multi_reduction <add>, %61, %cst_32 [1, 2] : vector<1x8x128xf32> to vector<1xf32>
      %63 = vector.shape_cast %62 : vector<1xf32> to vector<1x1x1xf32>
      %64 = vector.extract %63[0, 0, 0] : f32 from vector<1x1x1xf32>
      %65 = tpu.iota {dimensions = array<i32: 1>} : vector<1x8x128xi32>
      %66 = tpu.iota {dimensions = array<i32: 2>} : vector<1x8x128xi32>
      %c0_i32_33 = arith.constant 0 : i32
      %67 = vector.broadcast %c0_i32_33 : i32 to vector<1x8x128xi32>
      %68 = arith.cmpi eq, %65, %67 : vector<1x8x128xi32>
      %c0_i32_34 = arith.constant 0 : i32
      %69 = vector.broadcast %c0_i32_34 : i32 to vector<1x8x128xi32>
      %70 = arith.cmpi eq, %66, %69 : vector<1x8x128xi32>
      %71 = arith.andi %68, %70 : vector<1x8x128xi1>
      %cst_35 = arith.constant 0.000000e+00 : f32
      %72 = vector.broadcast %64 : f32 to vector<1x8x128xf32>
      %73 = vector.broadcast %cst_35 : f32 to vector<1x8x128xf32>
      %74 = arith.select %71, %72, %73 : vector<1x8x128xi1>, vector<1x8x128xf32>
      %c0_36 = arith.constant 0 : index
      %c0_37 = arith.constant 0 : index
      %c0_38 = arith.constant 0 : index
      %75 = vector.load %arg9[%c0_36, %c0_37, %c0_38] : memref<1x8x128xf32, #tpu.memory_space<vmem>>, vector<1x8x128xf32>
      tpu.vector_store %arg9[%c0_36, %c0_37, %c0_38], %74 {strides = array<i32>} : memref<1x8x128xf32, #tpu.memory_space<vmem>>, vector<1x8x128xf32>,
    } else {
    }
    return
  }
  func.func @transform_0(%arg0: i32, %arg1: i32) -> (i32, i32, i32) {
    %c0_i32 = arith.constant 0 : i32
    %c0_i32_0 = arith.constant 0 : i32
    return %arg0, %arg1, %c0_i32 : i32, i32, i32
  }
  func.func @transform_1(%arg0: i32, %arg1: i32) -> (i32, i32) {
    %c0_i32 = arith.constant 0 : i32
    %c0_i32_0 = arith.constant 0 : i32
    %c0_i32_1 = arith.constant 0 : i32
    return %c0_i32, %c0_i32_0 : i32, i32
  }
  func.func @transform_2(%arg0: i32, %arg1: i32) -> (i32, i32) {
    %c0_i32 = arith.constant 0 : i32
    %c0_i32_0 = arith.constant 0 : i32
    %c0_i32_1 = arith.constant 0 : i32
    return %c0_i32, %c0_i32_0 : i32, i32
  }
  func.func @transform_3(%arg0: i32, %arg1: i32) -> (i32, i32) {
    %c0_i32 = arith.constant 0 : i32
    %c0_i32_0 = arith.constant 0 : i32
    %c0_i32_1 = arith.constant 0 : i32
    return %c0_i32, %c0_i32_0 : i32, i32
  }
  func.func @transform_4(%arg0: i32, %arg1: i32) -> (i32, i32) {
    %c0_i32 = arith.constant 0 : i32
    %c0_i32_0 = arith.constant 0 : i32
    %c0_i32_1 = arith.constant 0 : i32
    return %c0_i32, %c0_i32_0 : i32, i32
  }
  func.func @transform_5(%arg0: i32, %arg1: i32) -> (i32, i32) {
    %c0_i32 = arith.constant 0 : i32
    %c0_i32_0 = arith.constant 0 : i32
    return %arg0, %c0_i32 : i32, i32
  }
  func.func @transform_6(%arg0: i32, %arg1: i32) -> (i32, i32) {
    %c0_i32 = arith.constant 0 : i32
    %c0_i32_0 = arith.constant 0 : i32
    return %arg0, %c0_i32 : i32, i32
  }
  func.func @transform_7(%arg0: i32, %arg1: i32) -> (i32, i32, i32) {
    %c0_i32 = arith.constant 0 : i32
    %c0_i32_0 = arith.constant 0 : i32
    %c0_i32_1 = arith.constant 0 : i32
    return %arg0, %c0_i32, %c0_i32_0 : i32, i32, i32
  }
}

</mosaic_0001>

<bundles_post_ra>
// kernel: multilabel_forward.1
= control target key start
LH: loop header
LB: loop body
LE: loop exit
PB: predicated region body
PF: predicated region fallthrough
CT: control target
= control target key end

     0   :  { %vm33_vm0 = vcmask 261120   ;;  %v414_v0 = vmov 0.0|0.0   ;;  %v415_v4 = vmov 0.0   ;;  %vm416_vm1 = vmmov 0   ;;  %s540_s1 = inlined_call_operand.vmem [shape: f32[32,32], index: 1, kind: input, shape index: {}]   ;;  %s541_s0 = inlined_call_operand.vmem [shape: f32[2,8,32], index: 0, kind: input, shape index: {}]   ;;  %s542_s3 = inlined_call_operand.vmem [shape: f32[32,128], index: 3, kind: input, shape index: {}]   ;;  %s543_s2 = inlined_call_operand.vmem [shape: f32[1,32], index: 2, kind: input, shape index: {}]   ;;  %s544_s4 = inlined_call_operand.vmem [shape: f32[1,128], index: 4, kind: input, shape index: {}]   ;;  %s545_s6 = inlined_call_operand.vmem [shape: f32[8,128], index: 6, kind: output, shape index: {0}]   ;;  %s546_s5 = inlined_call_operand.vmem [shape: f32[8,128], index: 5, kind: input, shape index: {}]   ;;  %s547_s7 = inlined_call_operand.vmem [shape: f32[1,8,128], index: 7, kind: output, shape index: {1}]  }
   0x1   :  { %391 = vmatprep.subr.bf16.mxu0 %v414_v0  ;;  %v126_v1 = vld [vmem:[%s540_s1] sm:$0xff]  ;;  %v127_v2 = vld [vmem:[%s540_s1 + $0x8] sm:$0xff]  ;;  %v128_v3 = vld [vmem:[%s540_s1 + $0x10] sm:$0xff]  ;;  %94 = vst.msk [vmem:[#allocation2] sm:$0xff] %vm33_vm0, %v415_v4  ;;  %397 = vmatprep.subr.bf16.mxu1 %v414_v0  ;;  %vm104_vm2 = vcmask 1041409   ;;  %vm106_vm3 = vcmask 1042434  }
   0x2   :  { %v392_v5 = vpack.c.bf16 %v127_v2, %v126_v1  ;;  %v129_v6 = vld [vmem:[%s540_s1 + $0x18] sm:$0xff]  ;;  %v25_v7 = vld [vmem:[%s541_s0] sm:$0xff]  ;;  %v26_v8 = vld [vmem:[%s541_s0 + $0x8] sm:$0xff]  ;;  %377 = vmatprep.mubr.msk.f32.mxu0 %vm416_vm1, %v415_v4  ;;  %388 = vmatprep.mubr.msk.f32.mxu1 %vm416_vm1, %v415_v4  ;;  %vm108_vm4 = vcmask 1043459   ;;  %vm110_vm5 = vcmask 1044484   ;;  %vm112_vm6 = vcmask 1045509  }
   0x3   :  { %v27_v9 = vld [vmem:[%s541_s0 + $0x10] sm:$0xff]  ;;  %v28_v10 = vld [vmem:[%s541_s0 + $0x18] sm:$0xff]  ;;  %v29_v11 = vld [vmem:[%s541_s0 + $0x20] sm:$0xff]  ;;  %v34_v12 = vsel %vm33_vm0, %v25_v7, 0.0  ;;  %v41_v13 = vsel %vm33_vm0, %v26_v8, 0.0  ;;  %v395_v14 = vpack.c.bf16 %v129_v6, %v128_v3  ;;  %vm114_vm7 = vcmask 1046534  }
   0x4   :  { %393 = vmatpush3.bf16.msra.mxu0 %v392_v5  ;;  %v30_v15 = vld [vmem:[%s541_s0 + $0x28] sm:$0xff]  ;;  %v31_v16 = vld [vmem:[%s541_s0 + $0x30] sm:$0xff]  ;;  %v32_v17 = vld [vmem:[%s541_s0 + $0x38] sm:$0xff]  ;;  %v35_v18 = vrot.slane %v34_v12, 4  ;;  %v42_v19 = vrot.slane %v41_v13, 4  ;;  %v48_v20 = vsel %vm33_vm0, %v27_v9, 0.0 }
   0x5   :  { %394 = vmatprep.subr.bf16.mxu0 %v414_v0  ;;  %v49_v21 = vrot.slane %v48_v20, 4  ;;  %v55_v22 = vsel %vm33_vm0, %v28_v10, 0.0  ;;  %v62_v23 = vsel %vm33_vm0, %v29_v11, 0.0  ;;  %v69_v24 = vsel %vm33_vm0, %v30_v15, 0.0 }
   0x6   :  { %v36_v25 = vadd.f32 %v35_v18, %v34_v12  ;;  %v43_v26 = vadd.f32 %v42_v19, %v41_v13  ;;  %v56_v27 = vrot.slane %v55_v22, 4  ;;  %v63_v28 = vrot.slane %v62_v23, 4 }
   0x7   :  { %v50_v29 = vadd.f32 %v49_v21, %v48_v20  ;;  %v70_v30 = vrot.slane %v69_v24, 4  ;;  %v76_v31 = vsel %vm33_vm0, %v31_v16, 0.0  ;;  %v83_v32 = vsel %vm33_vm0, %v32_v17, 0.0  ;;  %v211_v20 = vld [vmem:[%s542_s3] sm:$0xff]  ;;  %v212_v21 = vld [vmem:[%s542_s3 + $0x8] sm:$0xff] }
   0x8   :  { %396 = vmatpush3.bf16.msra.mxu0 %v395_v14  ;;  %v37_v33 = vrot.slane %v36_v25, 2  ;;  %v44_v34 = vrot.slane %v43_v26, 2  ;;  %v57_v35 = vadd.f32 %v56_v27, %v55_v22  ;;  %v64_v36 = vadd.f32 %v63_v28, %v62_v23  ;;  %v95_v13 = vld [vmem:[#allocation2] sm:$0xff]  ;;  %v213_v22 = vld [vmem:[%s542_s3 + $0x10] sm:$0xff] }
   0x9   :  { %v51_v37 = vrot.slane %v50_v29, 2  ;;  %v71_v38 = vadd.f32 %v70_v30, %v69_v24  ;;  %v77_v39 = vrot.slane %v76_v31, 4  ;;  %v84_v40 = vrot.slane %v83_v32, 4  ;;  %v214_v24 = vld [vmem:[%s542_s3 + $0x18] sm:$0xff] }
   0xa   :  { %v38_v41 = vadd.f32 %v37_v33, %v36_v25  ;;  %v45_v42 = vadd.f32 %v44_v34, %v43_v26  ;;  %v58_v43 = vrot.slane %v57_v35, 2  ;;  %v65_v44 = vrot.slane %v64_v36, 2  ;;  %v355_v26 = vld [vmem:[%s543_s2] ss:$0 sm:$0xff] }
   0xb   :  { %v52_v45 = vadd.f32 %v51_v37, %v50_v29  ;;  %v72_v46 = vrot.slane %v71_v38, 2  ;;  %v78_v47 = vadd.f32 %v77_v39, %v76_v31  ;;  %v85_v48 = vadd.f32 %v84_v40, %v83_v32  ;;  %v357_v31 = vld [vmem:[%s544_s4] ss:$0 sm:$0xff] }
   0xc   :  { %v39_v49 = vrot.slane %v38_v41, 1  ;;  %v46_v50 = vrot.slane %v45_v42, 1  ;;  %v59_v51 = vadd.f32 %v58_v43, %v57_v35  ;;  %v66_v52 = vadd.f32 %v65_v44, %v64_v36  ;;  %v296_v44 = vld [vmem:[%s546_s5] sm:$0xff] }
   0xd   :  { %v53_v53 = vrot.slane %v52_v45, 1  ;;  %v73_v54 = vadd.f32 %v72_v46, %v71_v38  ;;  %v79_v55 = vrot.slane %v78_v47, 2  ;;  %v86_v56 = vrot.slane %v85_v48, 2 }
   0xe   :  { %v40_v57 = vadd.f32 %v39_v49, %v38_v41  ;;  %v47_v58 = vadd.f32 %v46_v50, %v45_v42  ;;  %v60_v59 = vrot.slane %v59_v51, 1  ;;  %v67_v60 = vrot.slane %v66_v52, 1 }
   0xf   :  { %v54_v61 = vadd.f32 %v53_v53, %v52_v45  ;;  %v74_v62 = vrot.slane %v73_v54, 1  ;;  %v80_v63 = vadd.f32 %v79_v55, %v78_v47  ;;  %v87_v1 = vadd.f32 %v86_v56, %v85_v48 }
  0x10   :  { %v61_v2 = vadd.f32 %v60_v59, %v59_v51  ;;  %v68_v3 = vadd.f32 %v67_v60, %v66_v52  ;;  %v105_v4 = vsel %vm104_vm2, %v47_v58, %v40_v57  ;;  %vm116_vm8 = vcmask 1047559  }
  0x11   :  { %v75_v5 = vadd.f32 %v74_v62, %v73_v54  ;;  %v81_v6 = vrot.slane %v80_v63, 1  ;;  %v88_v7 = vrot.slane %v87_v1, 1  ;;  %v107_v8 = vsel %vm106_vm3, %v54_v61, %v105_v4 }
  0x12   :  { %v109_v9 = vsel %vm108_vm4, %v61_v2, %v107_v8  ;;  %v398_v23 = vpack.c.bf16 %v212_v21, %v211_v20  ;;  %v401_v25 = vpack.c.bf16 %v214_v24, %v213_v22  ;;  %v321_v42 = vlaneseq }
  0x13   :  { %v82_v10 = vadd.f32 %v81_v6, %v80_v63  ;;  %v89_v11 = vadd.f32 %v88_v7, %v87_v1  ;;  %v111_v12 = vsel %vm110_vm5, %v68_v3, %v109_v9 }
  0x14   :  { %v113_v14 = vsel %vm112_vm6, %v75_v5, %v111_v12  ;;  %399 = vmatpush3.bf16.msra.mxu1 %v398_v23  ;;  %v322_v46 = vshrl.u32 %v321_v42, 7  ;;  %v327_v47 = vand.u32 127, %v321_v42 }
  0x15   :  { %v115_v15 = vsel %vm114_vm7, %v82_v10, %v113_v14  ;;  %400 = vmatprep.subr.bf16.mxu1 %v414_v0 }
  0x16   :  { %v117_v16 = vsel %vm116_vm8, %v89_v11, %v115_v15  ;;  %vm328_vm10 = vcmp.lt.s32.totalorder %v322_v46, 2  ;;  %vm329_vm11 = vcmp.lt.s32.totalorder %v327_v47, 8  ;;  %vm341_vm14 = vcmp.eq.s32.totalorder %v322_v46, 0 }
  0x17   :  { %v119_v17 = vadd.f32 %v117_v16, %v95_v13  ;;  %vm330_vm13 = vmand %vm328_vm10, %vm329_vm11  ;;  %vm342_vm15 = vcmp.eq.s32.totalorder %v327_v47, 0 }
  0x18   :  { %402 = vmatpush3.bf16.msra.mxu1 %v401_v25 }
  0x19   :  { %120 = vst.msk [vmem:[#allocation2] sm:$0xff] %vm33_vm0, %v119_v17 }
  0x20   :  { %v124_v18 = vld [vmem:[#allocation2] sm:$0xff] }
  0x21   :  { %v125_v19 = vmul.f32 0.125, %v124_v18 }
  0x23   :  { %378 = vmatmul.mubr.msk.f32.vlgmr.msra.gmra.mrb[0].mxu0 %vm33_vm0, %v125_v19 }
  0xf6   :  { %v206_v27 = vpop.f32.mrb[0].mxu0 }
  0xf7   :  { %v207_v28 = vadd.f32 %v355_v26, %v206_v27  ;;  %v379_v29 = vpop.f32.mrb[1].mxu0 }
  0xf9   :  { %408 = vtanh.f32 %v207_v28 }
 0x103   :  { %v409_v30 = vpop.eup %408 }
 0x104   :  { %389 = vmatmul.mubr.msk.f32.vlgmr.msra.gmra.mrb[0].mxu1 %vm33_vm0, %v409_v30  ;;  %vm343_vm0 = vmand %vm341_vm14, %vm342_vm15 }
 0x1d7   :  { %v291_v32 = vpop.f32.mrb[0].mxu1 }
 0x1d8   :  { %v292_v33 = vadd.f32 %v357_v31, %v291_v32  ;;  %v390_v34 = vpop.f32.mrb[1].mxu1 }
 0x1da   :  { %295 = vst [vmem:[%s545_s6] sm:$0xff] %v292_v33  ;;  %v300_v0 = vand.u32 2147483647, %v292_v33  ;;  %v297_v49 = vmax.f32 %v292_v33, 0.0  ;;  %v298_v50 = vmul.f32 %v296_v44, %v292_v33 }
 0x1dc   :  { %v301_v35 = vsub.f32 0.0, %v300_v0  ;;  %v299_v56 = vsub.f32 %v297_v49, %v298_v50 }
 0x1de   :  { %v305_v36 = vand.u32 2147483647, %v301_v35  ;;  %v302_v53 = vmax.f32 %v301_v35, 0.0  ;;  %vm303_vm12 = vcmp.ne.f32.partialorder %v301_v35, %v301_v35 }
 0x1e0   :  { %v306_v37 = vsub.f32 0.0, %v305_v36 }
 0x1e2   :  { %v307_v38 = vmul.f32 1.442695, %v306_v37 }
 0x1e4   :  { %410 = vpow2.f32 %v307_v38 }
 0x1ee   :  { %v411_v39 = vpop.eup %410 }
 0x1ef   :  { %v309_v40 = vadd.f32 1.0, %v411_v39  ;;  %v312_v41 = vmul.f32 -0.5, %v411_v39  ;;  %v315_v45 = vand.u32 2147483647, %v411_v39 }
 0x1f1   :  { %412 = vlog2.f32 %v309_v40  ;;  %v313_v43 = vadd.f32 1.0, %v312_v41  ;;  %vm316_vm9 = vcmp.lt.f32.partialorder %v315_v45, 0.0004427343 }
 0x1f3   :  { %v314_v52 = vmul.f32 %v411_v39, %v313_v43 }
 0x1fb   :  { %v413_v48 = vpop.eup %412 }
 0x1fc   :  { %v311_v51 = vmul.f32 0.6931472, %v413_v48 }
 0x1fe   :  { %v317_v54 = vsel %vm316_vm9, %v314_v52, %v311_v51 }
 0x1ff   :  { %v318_v55 = vadd.f32 %v317_v54, %v302_v53 }
 0x201   :  { %v319_v57 = vsel %vm303_vm12, %v301_v35, %v318_v55 }
 0x202   :  { %v320_v58 = vadd.f32 %v319_v57, %v299_v56 }
 0x204   :  { %v331_v59 = vsel %vm330_vm13, %v320_v58, 0.0 }
 0x205   :  { %332 = vadd.xlane.f32.xlu0 %v331_v59 }
 0x292   :  { %v333_v60 = vpop.xlane.xlu0 %332 }
 0x293   :  { %v334_v61 = vrot.slane %v333_v60, 4 }
 0x295   :  { %v335_v62 = vadd.f32 %v334_v61, %v333_v60 }
 0x297   :  { %v336_v63 = vrot.slane %v335_v62, 2 }
 0x299   :  { %v337_v1 = vadd.f32 %v336_v63, %v335_v62 }
 0x29b   :  { %v338_v2 = vrot.slane %v337_v1, 1 }
 0x29d   :  { %v339_v3 = vadd.f32 %v338_v2, %v337_v1 }
 0x29f   :  { %403 = vpush %v339_v3 }
 0x2d0   :  { %s404_s5 = spop %403 }
 0x2d1   :  { %v344_v4 = vstv %s404_s5 }
 0x2d2   :  { %v345_v5 = vsel %vm343_vm0, %v344_v4, 0.0 }
 0x2d3   :  { %346 = vst [vmem:[%s547_s7] sm:$0xff] %v345_v5 }

</bundles_post_ra>
